<compile_context>
chip_gen: v7x
topology: tpu7x:2x2x1
jax: 0.10.0
libtpu: 0.0.40
codegen_flags: <defaults>
</compile_context>

<pallas_src>
import jax
import jax.numpy as jnp
from jax.experimental import pallas as pl
from jax.experimental.pallas import tpu as pltpu

_VMEM_LIMIT = 32 * 1024 * 1024  # fits v5e/v6e scoped defaults and v7x (64 MiB phys)


def _round_up(x, m):
    return ((x + m - 1) // m) * m


# ---------------------------------------------------------------------------
# Dense GEMM kernel: hoisted input projection  gates_x = x @ W_ih^T + b.
# Input is cast to bf16 inside the kernel (no separate wrapper cast pass);
# accumulation is f32; output dtype selectable (bf16 for gates_x).
# ---------------------------------------------------------------------------
def _dense_kernel(x_ref, w_ref, b_ref, o_ref):
    acc = jnp.dot(x_ref[...].astype(jnp.bfloat16), w_ref[...],
                  preferred_element_type=jnp.float32) + b_ref[...]
    o_ref[...] = acc.astype(o_ref.dtype)


def dense(x, w_t, b, out_dtype=jnp.float32, block_m=256):
    """y = x @ w_t + b.  x: (M, K) f32/bf16, w_t: (K, N), b: (N,). Returns (M, N).

    K and N are kept whole per block (fine at these sizes); at production
    sizes (Din~1024, 4C~4096) block N/K in multiples of 256 (v6e/v7x MXU).
    """
    M, K = x.shape
    N = w_t.shape[1]

    tm = _round_up(M, 8) if M <= block_m else block_m
    m_pad = _round_up(M, tm)
    if m_pad != M:
        x = jnp.pad(x, ((0, m_pad - M), (0, 0)))

    w_bf = jnp.asarray(w_t, jnp.bfloat16)
    b2 = jnp.asarray(b, jnp.float32).reshape(1, N)

    out = pl.pallas_call(
        _dense_kernel,
        out_shape=jax.ShapeDtypeStruct((m_pad, N), out_dtype),
        grid_spec=pltpu.PrefetchScalarGridSpec(
            num_scalar_prefetch=0,
            grid=(m_pad // tm,),
            in_specs=[
                pl.BlockSpec((tm, K), lambda i: (i, 0)),
                pl.BlockSpec((K, N), lambda i: (0, 0)),   # resident weight
                pl.BlockSpec((1, N), lambda i: (0, 0)),   # resident bias
            ],
            out_specs=pl.BlockSpec((tm, N), lambda i: (i, 0)),
        ),
        compiler_params=pltpu.CompilerParams(
            dimension_semantics=("parallel",),
            vmem_limit_bytes=_VMEM_LIMIT,
        ),
    )(x, w_bf, b2)
    return out[:M]


# ---------------------------------------------------------------------------
# Fused recurrent core + output projection.
# Given precomputed gates_x = x @ W_ih^T + (b_ih + b_hh) (bf16), run the LSTM
# recurrence over time and emit tanh(h_t @ W_proj^T + b_proj) per timestep.
# ---------------------------------------------------------------------------
def _lstmp_fused_kernel(gx_ref, whh_ref, wproj_ref, bproj_ref, y_ref,
                        h_sc, c_sc):
    """One time-block of the fused LSTM recurrence + projection.

    gx_ref:    (Tb, B, 4C) bf16  precomputed input gates (incl. combined bias)
    whh_ref:   (C, 4C)     bf16  hidden->gates weight (transposed), resident
    wproj_ref: (C, H)      bf16  projection weight (transposed), resident
    bproj_ref: (1, H)      f32   projection bias, resident
    y_ref:     (Tb, B, H)        layer output tanh(h_t @ Wp^T + bp)
    h_sc, c_sc:(B, C)      f32   recurrent state, persists across grid steps
    """
    tb = pl.program_id(0)

    @pl.when(tb == 0)
    def _():
        h_sc[...] = jnp.zeros_like(h_sc)
        c_sc[...] = jnp.zeros_like(c_sc)

    C = h_sc.shape[1]
    Tb = gx_ref.shape[0]
    # Hoisted VMEM reads, held in vregs across the unrolled time loop.
    whh = whh_ref[...]
    wproj = wproj_ref[...]
    bproj = bproj_ref[...]

    def sig(x):
        # Exact sigmoid with a single EUP op: sigmoid(x) = 0.5*tanh(0.5*x)+0.5.
        return 0.5 * jnp.tanh(0.5 * x) + 0.5

    def step(t, carry):
        h, c = carry
        gates = gx_ref[t].astype(jnp.float32) + jnp.dot(
            h.astype(whh.dtype), whh, preferred_element_type=jnp.float32)
        # Gate order [i, f, g, o] (PyTorch convention).  At production sizes
        # C should be a multiple of 128 so these lane slices are tile-aligned.
        i_g = sig(gates[:, 0 * C:1 * C])
        f_g = sig(gates[:, 1 * C:2 * C])
        g_g = jnp.tanh(gates[:, 2 * C:3 * C])
        o_g = sig(gates[:, 3 * C:4 * C])
        c_new = f_g * c + i_g * g_g
        h_new = o_g * jnp.tanh(c_new)
        # Fused projection + tanh: off the h->h chain, overlaps with the next
        # step's recurrent matmul; the (Tb, B, H) block is DMA'd to HBM once
        # per grid step (no intermediate h_seq round trip).
        y_t = jnp.tanh(jnp.dot(h_new.astype(wproj.dtype), wproj,
                               preferred_element_type=jnp.float32) + bproj)
        y_ref[t] = y_t.astype(y_ref.dtype)
        return (h_new, c_new)

    h, c = jax.lax.fori_loop(0, Tb, step, (h_sc[...], c_sc[...]), unroll=True)
    h_sc[...] = h
    c_sc[...] = c


def lstmp_recurrence_project(gates_x, w_hh, w_proj, b_proj,
                             out_dtype=jnp.float32, time_block=16):
    """gates_x: (T, B, 4C) bf16, w_hh: (4C, C), w_proj: (H, C), b_proj: (H,).

    Returns y = tanh(h_seq @ w_proj^T + b_proj): (T, B, H) in out_dtype.
    """
    T, B, fourC = gates_x.shape
    C = fourC // 4
    H = w_proj.shape[0]

    Tb = min(time_block, T)
    nblocks = pl.cdiv(T, Tb)
    t_pad = nblocks * Tb
    if t_pad != T:
        # Zero-padded trailing timesteps only advance the (discarded) state.
        gates_x = jnp.pad(gates_x, ((0, t_pad - T), (0, 0), (0, 0)))

    whh_bf = jnp.asarray(w_hh.T, jnp.bfloat16)      # (C, 4C)
    wproj_bf = jnp.asarray(w_proj.T, jnp.bfloat16)  # (C, H)
    bproj2 = jnp.asarray(b_proj, jnp.float32).reshape(1, H)

    y = pl.pallas_call(
        _lstmp_fused_kernel,
        out_shape=jax.ShapeDtypeStruct((t_pad, B, H), out_dtype),
        grid_spec=pltpu.PrefetchScalarGridSpec(
            num_scalar_prefetch=0,
            grid=(nblocks,),
            in_specs=[
                pl.BlockSpec((Tb, B, fourC), lambda tb: (tb, 0, 0)),
                pl.BlockSpec((C, fourC), lambda tb: (0, 0)),  # resident W_hh^T
                pl.BlockSpec((C, H), lambda tb: (0, 0)),      # resident W_proj^T
                pl.BlockSpec((1, H), lambda tb: (0, 0)),      # resident b_proj
            ],
            out_specs=pl.BlockSpec((Tb, B, H), lambda tb: (tb, 0, 0)),
            scratch_shapes=[
                pltpu.VMEM((B, C), jnp.float32),  # h state
                pltpu.VMEM((B, C), jnp.float32),  # c state
            ],
        ),
        compiler_params=pltpu.CompilerParams(
            dimension_semantics=("arbitrary",),  # strictly serial over time
            vmem_limit_bytes=_VMEM_LIMIT,
        ),
    )(gates_x, whh_bf, wproj_bf, bproj2)
    return y[:T]


# ---------------------------------------------------------------------------
# One LSTMP layer = LSTM -> Linear -> tanh, and the stacked forward.
# ---------------------------------------------------------------------------
def lstmp_layer(x, w_ih, w_hh, b_ih, b_hh, w_proj, b_proj,
                out_dtype=jnp.float32, time_block=16):
    """x: (T, B, Din) f32/bf16.  Weights use PyTorch conventions:
      w_ih: (4C, Din), w_hh: (4C, C), b_ih/b_hh: (4C,), w_proj: (H, C), b_proj: (H,).
    Returns (T, B, H) in out_dtype.
    """
    T, B, Din = x.shape
    fourC = w_ih.shape[0]

    # (1) Hoisted input projection: one big GEMM over the whole sequence,
    #     emitted in bf16 (biases folded in before the cast).
    gates_x = dense(x.reshape(T * B, Din), w_ih.T, b_ih + b_hh,
                    out_dtype=jnp.bfloat16)
    gates_x = gates_x.reshape(T, B, fourC)

    # (2)+(3) Serial recurrence fused with the projection + tanh epilogue.
    return lstmp_recurrence_project(gates_x, w_hh, w_proj, b_proj,
                                    out_dtype=out_dtype, time_block=time_block)


def lstmp_forward(xpad, params, time_block=16):
    """Full LSTMP forward: elayers of (LSTM -> Linear -> tanh). xpad: (T, B, idim)."""
    # Dropout in the reference nn.LSTM(num_layers=1) is a no-op; omitted (inference).
    n = len(params)
    for li, p in enumerate(params):
        # Inter-layer activations stay in bf16 (next layer's GEMM is bf16 anyway);
        # only the final layer output is f32.
        out_dtype = jnp.float32 if li == n - 1 else jnp.bfloat16
        xpad = lstmp_layer(xpad, p["w_ih"], p["w_hh"], p["b_ih"], p["b_hh"],
                           p["w_proj"], p["b_proj"],
                           out_dtype=out_dtype, time_block=time_block)
    return xpad


def init_lstmp_params(key, idim, elayers, cdim, hdim):
    """Deterministic parameter init, PyTorch-style U(-1/sqrt(cdim), 1/sqrt(cdim))."""
    params = []
    bound = 1.0 / jnp.sqrt(jnp.float32(cdim))
    for layer in range(elayers):
        inputdim = idim if layer == 0 else hdim
        keys = jax.random.split(key, 7)
        key = keys[0]
        u = lambda k, shape: jax.random.uniform(
            k, shape, jnp.float32, minval=-bound, maxval=bound)
        params.append(dict(
            w_ih=u(keys[1], (4 * cdim, inputdim)),
            w_hh=u(keys[2], (4 * cdim, cdim)),
            b_ih=u(keys[3], (4 * cdim,)),
            b_hh=u(keys[4], (4 * cdim,)),
            w_proj=u(keys[5], (hdim, cdim)),
            b_proj=u(keys[6], (hdim,)),
        ))
    return params


def _reference_forward(xpad, params):
    """Pure-JAX f32 reference (lax.scan) for correctness check."""
    def one_layer(x, p):
        C = p["w_hh"].shape[1]
        b = p["b_ih"] + p["b_hh"]

        def step(carry, xt):
            h, c = carry
            gates = xt @ p["w_ih"].T + h @ p["w_hh"].T + b
            i = jax.nn.sigmoid(gates[:, 0 * C:1 * C])
            f = jax.nn.sigmoid(gates[:, 1 * C:2 * C])
            g = jnp.tanh(gates[:, 2 * C:3 * C])
            o = jax.nn.sigmoid(gates[:, 3 * C:4 * C])
            c_new = f * c + i * g
            h_new = o * jnp.tanh(c_new)
            return (h_new, c_new), h_new

        B = x.shape[1]
        h0 = jnp.zeros((B, C), jnp.float32)
        (_, _), ys = jax.lax.scan(step, (h0, h0), x)
        return jnp.tanh(ys @ p["w_proj"].T + p["b_proj"])

    for p in params:
        xpad = one_layer(xpad, p)
    return xpad


if __name__ == "__main__":
    # Small config consistent with the module's forward: xpad is (T, B, idim),
    # PyTorch nn.LSTM default seq-first layout.
    idim, elayers, cdim, hdim = 16, 2, 32, 32
    T, B = 8, 2

    key = jax.random.PRNGKey(0)
    kx, kp = jax.random.split(key)
    xpad = jax.random.normal(kx, (T, B, idim), jnp.float32)
    params = init_lstmp_params(kp, idim, elayers, cdim, hdim)

    out = lstmp_forward(xpad, params)
    out = jax.block_until_ready(out)

    ref = _reference_forward(xpad, params)
    assert out.shape == (T, B, hdim)
    # bf16 MXU operands / bf16 gates_x & inter-layer activations (f32 accumulate
    # and f32 recurrent state) vs the f32 reference -> relaxed tolerance.
    # TODO(synk): re-validate bf16 intermediates at realistic sequence lengths.
    assert jnp.allclose(out, ref, atol=5e-2, rtol=0.0), "mismatch vs reference"

    print("KERNEL_OK")
</pallas_src>

<mosaic_0001>
module attributes {stable_mosaic.version = 11 : i64} {
  func.func @_dense_kernel(%arg0: i32, %arg1: memref<16x16xf32, #tpu.memory_space<vmem>>, %arg2: memref<16x128xbf16, #tpu.memory_space<vmem>>, %arg3: memref<1x128xf32, #tpu.memory_space<vmem>>, %arg4: memref<16x128xbf16, #tpu.memory_space<vmem>>) attributes {dimension_semantics = [#tpu.dimension_semantics<parallel>], iteration_bounds = array<i64: 1>, scalar_prefetch = 0 : i64, scratch_operands = 0 : i64, tpu.core_type = #tpu.core_type<tc>, window_params = [{transform_indices = @transform_0, window_bounds = array<i64: 16, 16>}, {pipeline_mode = #tpu.pipeline_mode<synchronous>, transform_indices = @transform_1, window_bounds = array<i64: 16, 128>}, {pipeline_mode = #tpu.pipeline_mode<synchronous>, transform_indices = @transform_2, window_bounds = array<i64: 1, 128>}, {transform_indices = @transform_3, window_bounds = array<i64: 16, 128>}]} {
    %c0 = arith.constant 0 : index
    %c0_0 = arith.constant 0 : index
    %0 = vector.load %arg1[%c0, %c0_0] : memref<16x16xf32, #tpu.memory_space<vmem>>, vector<16x16xf32>
    %1 = arith.truncf %0 : vector<16x16xf32> to vector<16x16xbf16>
    %c0_1 = arith.constant 0 : index
    %c0_2 = arith.constant 0 : index
    %2 = vector.load %arg2[%c0_1, %c0_2] : memref<16x128xbf16, #tpu.memory_space<vmem>>, vector<16x128xbf16>
    %cst = arith.constant dense<0.000000e+00> : vector<16x128xf32>
    %3 = tpu.matmul %1, %2, %cst {dimension_numbers = #tpu.dot_dimension_numbers<[1], [0], [0], [1], [0, 0, 1, 1], [], []>} : vector<16x16xbf16>, vector<16x128xbf16>, vector<16x128xf32> -> vector<16x128xf32>
    %c0_3 = arith.constant 0 : index
    %c0_4 = arith.constant 0 : index
    %4 = vector.load %arg3[%c0_3, %c0_4] : memref<1x128xf32, #tpu.memory_space<vmem>>, vector<1x128xf32>
    %5 = vector.broadcast %4 : vector<1x128xf32> to vector<16x128xf32>
    %6 = arith.addf %3, %5 : vector<16x128xf32>
    %7 = arith.truncf %6 : vector<16x128xf32> to vector<16x128xbf16>
    %c0_5 = arith.constant 0 : index
    %c0_6 = arith.constant 0 : index
    %8 = vector.load %arg4[%c0_5, %c0_6] : memref<16x128xbf16, #tpu.memory_space<vmem>>, vector<16x128xbf16>
    tpu.vector_store %arg4[%c0_5, %c0_6], %7 {strides = array<i32>} : memref<16x128xbf16, #tpu.memory_space<vmem>>, vector<16x128xbf16>,
    return
  }
  func.func @transform_0(%arg0: i32) -> (i32, i32) {
    %c0_i32 = arith.constant 0 : i32
    %c0_i32_0 = arith.constant 0 : i32
    return %arg0, %c0_i32 : i32, i32
  }
  func.func @transform_1(%arg0: i32) -> (i32, i32) {
    %c0_i32 = arith.constant 0 : i32
    %c0_i32_0 = arith.constant 0 : i32
    %c0_i32_1 = arith.constant 0 : i32
    return %c0_i32, %c0_i32_0 : i32, i32
  }
  func.func @transform_2(%arg0: i32) -> (i32, i32) {
    %c0_i32 = arith.constant 0 : i32
    %c0_i32_0 = arith.constant 0 : i32
    %c0_i32_1 = arith.constant 0 : i32
    return %c0_i32, %c0_i32_0 : i32, i32
  }
  func.func @transform_3(%arg0: i32) -> (i32, i32) {
    %c0_i32 = arith.constant 0 : i32
    %c0_i32_0 = arith.constant 0 : i32
    return %arg0, %c0_i32 : i32, i32
  }
}

</mosaic_0001>

<bundles_post_ra>
// kernel: tpu_custom_call.1
= control target key start
LH: loop header
LB: loop body
LE: loop exit
PB: predicated region body
PF: predicated region fallthrough
CT: control target
= control target key end

     0   :  { %8 = vsyncpa [#allocation3], 0  ;;  %s311_s0 = inlined_call_operand.hbm [shape: f32[16,16], index: 0, kind: input, shape index: {}]   ;;  %s312_s1 = inlined_call_operand.hbm [shape: bf16[16,128], index: 1, kind: input, shape index: {}]   ;;  %s313_s2 = inlined_call_operand.vmem [shape: f32[1,128], index: 2, kind: input, shape index: {}]   ;;  %s314_s3 = inlined_call_operand.hbm [shape: bf16[16,128], index: 3, kind: output, shape index: {}]  }
   0x1   :  { %9 = vsyncpa [#allocation6], 0 }
   0x2   :  { %10 = vsyncpa [#allocation4], 0  ;;  %s237_s12 = smov [#allocation2]   ;;  %s165_s16 = scalar_lea.hbm %s311_s0, 256 }
   0x3   :  { %s16_s13 = sshll.u32 %s237_s12, 4  ;;  %p166_p0 = scmp.ne.s32.totalorder %s311_s0, %s165_s16  ;;  %s17_s13 = int_to_ptr.vmem [resolvable:$true] %s16_s13 }
   0x4   :  { %p169_p1 = scmp.lt.u32.totalorder %s165_s16, %s311_s0 }
   0x6   :  { %p171_p2 = pnand %p169_p1, %p166_p0 }
   0x8   :  { %174 = shalt.err (!%p171_p2)
}
   0x9   :  { %s175_s21 = scalar_lea.vmem %s17_s13, 256  ;;  %p180_p4 = scmp.lt.s32.totalorder %s17_s13, %s17_s13 }
   0xa   :  { %p176_p3 = scmp.ne.s32.totalorder %s17_s13, %s175_s21  ;;  %p181_p5 = scmp.lt.s32.totalorder %s175_s21, %s175_s21 }
   0xc   :  { %p182_p6 = por %p181_p5, %p180_p4 }
   0xe   :  { %p183_p7 = pnand %p182_p6, %p176_p3 }
  0x10   :  { %186 = shalt.err (!%p183_p7)
}
  0x11   :  { %s238_s22 = smov 128   ;;  %s239_s23 = smov 8  }
  0x12   :  { %22 = dma.hbm_to_vmem [thread:$0]  %s311_s0, 256, %s17_s13, [#allocation3], %s238_s22, %s238_s22, %s239_s23  }
  0x13   :  { %s240_s26 = smov [#allocation5]   ;;  %s187_s30 = scalar_lea.hbm %s312_s1, 128 }
  0x14   :  { %s28_s27 = sshll.u32 %s240_s26, 4  ;;  %p188_p8 = scmp.ne.s32.totalorder %s312_s1, %s187_s30  ;;  %s29_s27 = int_to_ptr.vmem [resolvable:$true] %s28_s27 }
  0x15   :  { %p191_p9 = scmp.lt.u32.totalorder %s187_s30, %s312_s1 }
  0x17   :  { %p193_p10 = pnand %p191_p9, %p188_p8 }
  0x19   :  { %196 = shalt.err (!%p193_p10)
}
  0x1a   :  { %s197_s8 = scalar_lea.vmem %s29_s27, 128  ;;  %p202_p12 = scmp.lt.s32.totalorder %s29_s27, %s29_s27 }
  0x1b   :  { %p198_p11 = scmp.ne.s32.totalorder %s29_s27, %s197_s8  ;;  %p203_p13 = scmp.lt.s32.totalorder %s197_s8, %s197_s8 }
  0x1d   :  { %p204_p0 = por %p203_p13, %p202_p12 }
  0x1f   :  { %p205_p1 = pnand %p204_p0, %p198_p11 }
  0x21   :  { %208 = shalt.err (!%p205_p1)
}
  0x22   :  { %s241_s0 = smov 64   ;;  %s242_s9 = smov 4  }
  0x23   :  { %34 = dma.hbm_to_vmem [thread:$0]  %s312_s1, 128, %s29_s27, [#allocation6], %s241_s0, %s241_s0, %s242_s9  }
  0x24   :  { %231 = dma.done.wait [#allocation3], 256  }
  0x25   :  { %232 = vsyncadd [#allocation3], 4294967040 }
  0x26   :  { %233 = dma.done.wait [#allocation6], 128  }
  0x27   :  { %234 = vsyncadd [#allocation6], 4294967168  ;;  %v243_v0 = vmov 0.0   ;;  %vm244_vm0 = vmmov 0   ;;  %v164_v1 = vld [vmem:[#allocation5] sm:$0xff]   ;;  %v44_v2 = vld [vmem:[#allocation2] sm:$0xff] }
  0x28   :  { %149 = vmatprep.subr.bf16.mxu0 %v243_v0  ;;  %151 = vmatprep.mubr.msk.bf16.mxu0 %vm244_vm0, %v243_v0  ;;  %v45_v3 = vld [vmem:[#allocation2 + $0x8] sm:$0xff]  ;;  %vm62_vm1 = vcmask 130048   ;;  %v135_v5 = vld [vmem:[%s313_s2] ss:$0 sm:$0xff]  ;;  %s245_s1 = smov [#allocation7]  }
  0x29   :  { %150 = vmatpush3.bf16.msra.mxu0 %v164_v1  ;;  %v46_v4 = vpack.c.bf16 %v45_v3, %v44_v2  ;;  %s122_s14 = sshll.u32 %s245_s1, 4  ;;  %s123_s14 = int_to_ptr.vmem [resolvable:$true] %s122_s14 }
  0x2a   :  { %s209_s15 = scalar_lea.vmem %s123_s14, 128  ;;  %p214_p3 = scmp.lt.s32.totalorder %s123_s14, %s123_s14 }
  0x2b   :  { %p210_p2 = scmp.ne.s32.totalorder %s123_s14, %s209_s15  ;;  %p215_p4 = scmp.lt.s32.totalorder %s209_s15, %s209_s15 }
  0x2c   :  { %152 = vmatmul.mubr.msk.bf16.vlgmr.msra.gmra.mrb[0].mxu0 %vm62_vm1, %v46_v4 }
  0x2d   :  { %p216_p5 = por %p215_p4, %p214_p3 }
  0x2f   :  { %p217_p6 = pnand %p216_p5, %p210_p2 }
  0xff   :  { %v100_v6 = vpop.f32.mrb[0].mxu0 }
 0x100   :  { %v153_v7 = vpop.f32.mrb[1].mxu0  ;;  %v101_v9 = vadd.f32 %v135_v5, %v100_v6 }
 0x101   :  { %v103_v8 = vpop.f32.mrb[2].mxu0 }
 0x102   :  { %v104_v10 = vadd.f32 %v135_v5, %v103_v8  ;;  %v154_v11 = vpop.f32.mrb[3].mxu0 }
 0x104   :  { %v145_v12 = vpack.c.bf16 %v104_v10, %v101_v9 }
 0x106   :  { %146 = vst [vmem:[#allocation7] sm:$0xff] %v145_v12  }
 0x107   :  { %220 = shalt.err (!%p217_p6)
}
 0x108   :  { %s221_s17 = scalar_lea.hbm %s314_s3, 128 }
 0x109   :  { %p222_p7 = scmp.ne.s32.totalorder %s314_s3, %s221_s17  ;;  %p225_p8 = scmp.lt.u32.totalorder %s221_s17, %s314_s3 }
 0x10b   :  { %p227_p9 = pnand %p225_p8, %p222_p7 }
 0x10d   :  { %230 = shalt.err (!%p227_p9)
}
 0x10e   :  { %128 = dma.vmem_to_hbm [thread:$0]  %s123_s14, 128, %s314_s3, [#allocation4], %s241_s0, %s241_s0, %s242_s9  }
 0x10f   :  { %235 = dma.done.wait [#allocation4], 128  }
 0x110   :  { %236 = vsyncadd [#allocation4], 4294967168 }
 0x111   :  { %132 = vsyncpa [#allocation3], 1 }
 0x112   :  { %133 = vsyncpa [#allocation6], 1 }
 0x113   :  { %134 = vsyncpa [#allocation4], 1 }

</bundles_post_ra>
